<compile_context>
chip_gen: v7x
topology: tpu7x:2x2x1
jax: 0.10.0
libtpu: 0.0.40
codegen_flags: <defaults>
</compile_context>

<pallas_src>
import jax
import jax.numpy as jnp
from jax.experimental import pallas as pl
from jax.experimental.pallas import tpu as pltpu

_LANES = 128
_MAX_BLOCK_ROWS = 4096          # 4096 x 128 f32 = 2 MiB per block
_SMALL_N = 1 << 16              # below this, launch overhead dominates -> jnp


def _metal_kernel(x_ref, w_ref, b_ref, o_ref):
    # x_ref: (block_rows, 128) VMEM f32 tile (lane-dense).
    # w_ref, b_ref: (1,) SMEM f32 scalars -> broadcast into a single VPU
    # multiply/add; sigmoid goes to the EUP (separate bundle slot).
    w = w_ref[0]
    b = b_ref[0]
    o_ref[...] = jax.nn.sigmoid(x_ref[...] * w + b)


def metal_net_forward(x, w, b, *, use_pallas=None):
    """MetalNet forward: sigmoid(x @ W.T + b).squeeze(1).

    x: (N, 1) or (N,) float; w: (1, 1); b: (1,)  ->  (N,) float32.
    """
    x_flat = jnp.asarray(x, jnp.float32).reshape(-1)
    n = x_flat.shape[0]
    w_s = jnp.asarray(w, jnp.float32).reshape((1,))
    b_s = jnp.asarray(b, jnp.float32).reshape((1,))

    if use_pallas is None:
        use_pallas = n >= _SMALL_N
    if n == 0 or not use_pallas:
        # Small-N fast path (and N == 0 guard): XLA fuses this into one pass.
        return jax.nn.sigmoid(x_flat * w_s[0] + b_s[0])

    rows = pl.cdiv(n, _LANES)

    # Pad only a ragged tail up to the next 128-lane row (<= 127 elements);
    # the lane-aligned common case is a zero-copy reshape (no pad, no slice).
    n_row_aligned = rows * _LANES
    ragged = n_row_aligned != n
    if ragged:
        x2d = jnp.pad(x_flat, (0, n_row_aligned - n)).reshape(rows, _LANES)
    else:
        x2d = x_flat.reshape(rows, _LANES)

    # ~2 MiB f32 blocks amortize per-grid-step overhead; keep >= ~4 grid
    # steps for large N so the "parallel" axis spans both v7x TensorCores.
    block_rows = max(8, min(_MAX_BLOCK_ROWS, 8 * pl.cdiv(pl.cdiv(rows, 4), 8)))
    grid = (pl.cdiv(rows, block_rows),)   # boundary block masked by Pallas

    out2d = pl.pallas_call(
        _metal_kernel,
        out_shape=jax.ShapeDtypeStruct((rows, _LANES), jnp.float32),
        grid_spec=pltpu.PrefetchScalarGridSpec(
            num_scalar_prefetch=0,
            grid=grid,
            in_specs=[
                pl.BlockSpec((block_rows, _LANES), lambda i: (i, 0)),  # x tiles
                pl.BlockSpec(memory_space=pltpu.MemorySpace.SMEM),     # weight
                pl.BlockSpec(memory_space=pltpu.MemorySpace.SMEM),     # bias
            ],
            out_specs=pl.BlockSpec((block_rows, _LANES), lambda i: (i, 0)),
        ),
        compiler_params=pltpu.CompilerParams(
            dimension_semantics=("parallel",)),
        # Donate the padded temporary to the output in the ragged case
        # (identical shape/index_map, elementwise) -- halves peak HBM
        # footprint there.  Not aliased in the aligned case because the input
        # may alias the caller's array (would force a defensive copy).
        input_output_aliases=({0: 0} if ragged else {}),
    )(x2d, w_s, b_s)

    y = out2d.reshape(-1)
    return y[:n] if ragged else y


if __name__ == "__main__":
    key = jax.random.PRNGKey(0)
    kx, kw, kb = jax.random.split(key, 3)

    # Deterministic synthetic nn.Linear(1, 1) parameters.
    w = jax.random.normal(kw, (1, 1), dtype=jnp.float32)   # fc.weight
    b = jax.random.normal(kb, (1,), dtype=jnp.float32)     # fc.bias

    def ref_fn(xv):
        # Pure-JAX reference: sigmoid(x @ W.T + b).squeeze(1)
        return jax.nn.sigmoid(xv[:, 0] * w[0, 0] + b[0])

    # 1) Typical tiny batch (N=8): exercises the small-N jnp fast path.
    x_small = jax.random.normal(kx, (8, 1), dtype=jnp.float32)
    y_small = jax.block_until_ready(metal_net_forward(x_small, w, b))
    assert y_small.shape == (8,), y_small.shape
    assert jnp.allclose(y_small, ref_fn(x_small), atol=1e-5)

    # 2) Lane-aligned batch, forced through the Pallas kernel (4-step grid,
    #    zero-copy reshape path, no pad / no slice).
    x_al = jax.random.normal(kx, (8192, 1), dtype=jnp.float32)
    y_al = jax.block_until_ready(metal_net_forward(x_al, w, b, use_pallas=True))
    assert y_al.shape == (8192,), y_al.shape
    assert jnp.allclose(y_al, ref_fn(x_al), atol=1e-5)

    # 3) Ragged batch, forced through the Pallas kernel (tail pad <= 127 elems,
    #    input buffer donated to output, boundary-block masking).
    x_rag = jax.random.normal(kx, (1000, 1), dtype=jnp.float32)
    y_rag = jax.block_until_ready(metal_net_forward(x_rag, w, b, use_pallas=True))
    assert y_rag.shape == (1000,), y_rag.shape
    assert jnp.allclose(y_rag, ref_fn(x_rag), atol=1e-5)

    print("KERNEL_OK")
</pallas_src>

<mosaic_0001>
module attributes {stable_mosaic.version = 11 : i64} {
  func.func @_metal_kernel(%arg0: i32, %arg1: memref<16x128xf32, #tpu.memory_space<vmem>>, %arg2: memref<1xf32, #tpu.memory_space<smem>>, %arg3: memref<1xf32, #tpu.memory_space<smem>>, %arg4: memref<16x128xf32, #tpu.memory_space<vmem>>) attributes {dimension_semantics = [#tpu.dimension_semantics<parallel>], iteration_bounds = array<i64: 4>, scalar_prefetch = 0 : i64, scratch_operands = 0 : i64, tpu.core_type = #tpu.core_type<tc>, window_params = [{transform_indices = @transform_0, window_bounds = array<i64: 16, 128>}, {transform_indices = @transform_1, window_bounds = array<i64: 1>}, {transform_indices = @transform_2, window_bounds = array<i64: 1>}, {transform_indices = @transform_3, window_bounds = array<i64: 16, 128>}]} {
    %c0 = arith.constant 0 : index
    %0 = memref.load %arg2[%c0] : memref<1xf32, #tpu.memory_space<smem>>
    %c0_0 = arith.constant 0 : index
    %1 = memref.load %arg3[%c0_0] : memref<1xf32, #tpu.memory_space<smem>>
    %c0_1 = arith.constant 0 : index
    %c0_2 = arith.constant 0 : index
    %2 = vector.load %arg1[%c0_1, %c0_2] : memref<16x128xf32, #tpu.memory_space<vmem>>, vector<16x128xf32>
    %3 = vector.broadcast %0 : f32 to vector<16x128xf32>
    %4 = arith.mulf %2, %3 : vector<16x128xf32>
    %5 = vector.broadcast %1 : f32 to vector<16x128xf32>
    %6 = arith.addf %4, %5 : vector<16x128xf32>
    %7 = arith.negf %6 : vector<16x128xf32>
    %8 = math.exp %7 : vector<16x128xf32>
    %cst = arith.constant 1.000000e+00 : f32
    %9 = vector.broadcast %cst : f32 to vector<16x128xf32>
    %10 = arith.addf %9, %8 : vector<16x128xf32>
    %11 = arith.divf %9, %10 : vector<16x128xf32>
    %c0_3 = arith.constant 0 : index
    %c0_4 = arith.constant 0 : index
    %12 = vector.load %arg4[%c0_3, %c0_4] : memref<16x128xf32, #tpu.memory_space<vmem>>, vector<16x128xf32>
    tpu.vector_store %arg4[%c0_3, %c0_4], %11 {strides = array<i32>} : memref<16x128xf32, #tpu.memory_space<vmem>>, vector<16x128xf32>,
    return
  }
  func.func @transform_0(%arg0: i32) -> (i32, i32) {
    %c0_i32 = arith.constant 0 : i32
    %c0_i32_0 = arith.constant 0 : i32
    return %arg0, %c0_i32 : i32, i32
  }
  func.func @transform_1(%arg0: i32) -> i32 {
    %c0_i32 = arith.constant 0 : i32
    %c0_i32_0 = arith.constant 0 : i32
    return %c0_i32 : i32
  }
  func.func @transform_2(%arg0: i32) -> i32 {
    %c0_i32 = arith.constant 0 : i32
    %c0_i32_0 = arith.constant 0 : i32
    return %c0_i32 : i32
  }
  func.func @transform_3(%arg0: i32) -> (i32, i32) {
    %c0_i32 = arith.constant 0 : i32
    %c0_i32_0 = arith.constant 0 : i32
    return %arg0, %c0_i32 : i32, i32
  }
}

</mosaic_0001>

<bundles_post_ra>
// kernel: tpu_custom_call.1
= control target key start
LH: loop header
LB: loop body
LE: loop exit
PB: predicated region body
PF: predicated region fallthrough
CT: control target
= control target key end

     0   :  { %s670_s0 = inlined_call_operand.hbm [shape: f32[64,128], index: 0, kind: input, shape index: {}]   ;;  %s671_s1 = inlined_call_operand.<no memory space> [shape: f32[1], index: 1, kind: input, shape index: {}]   ;;  %s672_s2 = inlined_call_operand.<no memory space> [shape: f32[1], index: 2, kind: input, shape index: {}]   ;;  %s673_s3 = inlined_call_operand.hbm [shape: f32[64,128], index: 3, kind: output, shape index: {}]  }
   0x1   :  { %8 = sst [smem:[#allocation2]] %s671_s1 }
   0x2   :  { %9 = sst [smem:[#allocation3]] %s672_s2 }
   0x3   :  { %10 = vsyncpa [#allocation5], 0 }
   0x4   :  { %12 = vsyncpa [#allocation5 + $0x1], 0 }
   0x5   :  { %13 = vsyncpa [#allocation6], 0 }
   0x6   :  { %15 = vsyncpa [#allocation6 + $0x1], 0  ;;  %s510_s16 = smov 0   ;;  %s512_s17 = smov 0  }
   0x7   :  { %s514_s18 = smov 0   ;;  %s516_s19 = smov 0  }
   0x8 LB: > { %s531_s1 = sadd.s32 4294967295, %s476_s19   ;;  %s304_s2 = sadd.s32 4294967294, %s476_s19   ;;  %s476_s19 = sphi %s516_s19, %s685_s19   ;;  %s472_s18 = sphi %s514_s18, %s684_s18   ;;  %s468_s17 = sphi %s512_s17, %s683_s17   ;;  %s464_s16 = sphi %s510_s16, %s682_s16  }
   0x9   : > { %s535_s20 = sadd.s32 1, %s476_s19   ;;  %s28_s21 = sadd.s32 1, %s472_s18 }
   0xa   : > { %s25_s22 = ssub.s32 %s476_s19, %s535_s20  ;;  %p35_p0 = scmp.ne.s32.totalorder %s472_s18, %s468_s17 }
   0xb   : > { %p26_p1 = scmp.eq.s32.totalorder %s25_s22, 0  ;;  %p36_p2 = scmp.eq.s32.totalorder %s476_s19, 0 }
   0xc   : > { %p41_p3 = scmp.ne.s32.totalorder %s468_s17, %s464_s16  ;;  %p42_p4 = scmp.eq.s32.totalorder %s531_s1, 0 }
   0xd   : > { %s547_s23 = scalar_select %p26_p1, %s472_s18, %s28_s21  }
   0xe   : > { %p549_p5 = por %p36_p2, %p35_p0  ;;  %p553_p6 = por %p42_p4, %p41_p3 }
   0xf   : > { %p107_p7 = scmp.eq.s32.totalorder %s531_s1, 3  ;;  %p113_p8 = scmp.eq.s32.totalorder %s304_s2, 3 }
  0x10   : > { %p334_p9 = scmp.lt.s32.totalorder %s476_s19, 4  ;;  %s139_s28 = sand.u32 1, %s472_s18  }
  0x11   : > { %p559_p10 = por %p107_p7, %p35_p0  ;;  %p563_p11 = por %p113_p8, %p41_p3 }
  0x12   : > { %s320_s29 = sshll.u32 %s476_s19, 8  ;;  %s307_s30 = sshll.u32 %s139_s28, 4 }
  0x13   : > { %s677_s26 = scalar_select %p559_p10, 1, 0 }
  0x14   : > { %s678_s27 = scalar_select %p563_p11, 1, 0 }
  0x15   : > { %s572_s6 = scalar_lea.hbm %s670_s0, %s320_s29  ;;  %s143_s7 = scalar_lea.vmem [#allocation4], %s307_s30 }
  0x16   : > { %s150_s8 = sshll.u32 %s143_s7, 4  ;;  %p576_p12 = pnand %p334_p9, %p549_p5  ;;  %s580_s8 = int_to_ptr.vmem [resolvable:$true] %s150_s8 }
  0x17   : > { %s582_s10 = scalar_lea.sflag [#allocation5], %s139_s28  ;;  %s380_s11 = scalar_lea.hbm %s572_s6, 256 }
  0x18   : > { %p381_p13 = scmp.ne.s32.totalorder %s572_s6, %s380_s11  ;;  %p382_p0 = pneg %p576_p12 }
  0x19   : > { %s385_s14 = scalar_lea.hbm %s670_s0, 1024  ;;  %p386_p3 = scmp.lt.u32.totalorder %s572_s6, %s670_s0 }
  0x1a   : > { %p383_p1 = pnand %p382_p0, %p381_p13  ;;  %p387_p4 = scmp.lt.u32.totalorder %s385_s14, %s380_s11 }
  0x1b   : > { %p389_p7 = scmp.lt.u32.totalorder %s380_s11, %s572_s6 }
  0x1c   : > { %p384_p2 = pneg %p383_p1  ;;  %p388_p5 = por %p387_p4, %p386_p3 }
  0x1e   : > { %p390_p8 = por %p389_p7, %p388_p5 }
  0x20   : > { %p391_p9 = pnand %p390_p8, %p384_p2 }
  0x22   : > { %394 = shalt.err (!%p391_p9)
}
  0x23   : > { %s395_s21 = scalar_lea.vmem %s580_s8, 256  ;;  %s478_s22 = smov [#allocation4]  }
  0x24   : > { %p396_p13 = scmp.ne.s32.totalorder %s580_s8, %s395_s21  ;;  %s400_s24 = sshll.u32 %s478_s22, 4  ;;  %s401_s24 = int_to_ptr.vmem [resolvable:$false] %s400_s24 }
  0x25   : > { %s402_s28 = scalar_lea.vmem %s401_s24, 512  ;;  %p403_p10 = scmp.lt.s32.totalorder %s580_s8, %s401_s24 }
  0x26   : > { %p398_p1 = pnand %p396_p13, %p382_p0  ;;  %p404_p3 = scmp.lt.s32.totalorder %s402_s28, %s395_s21 }
  0x28   : > { %p399_p11 = pneg %p398_p1  ;;  %p405_p4 = por %p404_p3, %p403_p10 }
  0x2a   : > { %p406_p5 = pnand %p405_p4, %p399_p11 }
  0x2c   : > { %409 = shalt.err (!%p406_p5)
}
  0x2d   : > { %s479_s29 = smov 128   ;;  %s480_s30 = smov 8  }
  0x2e   : > { %329 = dma.hbm_to_vmem [thread:$0]  (!%p576_p12), %s572_s6, 256, %s580_s8, %s582_s10, %s479_s29, %s479_s29, %s480_s30  }
  0x2f   : > { %p310_p0 = scmp.ge.s32.totalorder %s476_s19, 1  ;;  %p158_p2 = scmp.lt.s32.totalorder %s476_s19, 5 }
  0x31   : > { %p159_p7 = pnand %p310_p0, %p158_p2 }
  0x32   : > { %s613_s4 = sand.u32 (!%p159_p7), 1, %s468_s17  }
  0x33   : > { %162 = sbr.rel (%p159_p7) target bundleno = 112 (0x70), region = 32  ;;  %s311_s5 = sshll.u32 (!%p159_p7), %s613_s4, 4 }
  0x34   : > { %s165_s7 = scalar_lea.sflag (!%p159_p7), [#allocation5], %s613_s4  ;;  %s168_s11 = scalar_lea.vmem (!%p159_p7), [#allocation4], %s311_s5 }
  0x3a   : > { %455 = dma.done.wait (%p553_p6), %s165_s7, 256  }
  0x3b   : > { %457 = vsyncadd (%p553_p6), %s165_s7, 4294967040  ;;  %s193_s9 = sld [smem:[#allocation2]]  ;;  %v195_v0 = vld [vmem:[%s168_s11] sm:$0xff]  ;;  %v196_v1 = vld [vmem:[%s168_s11 + $0x8] sm:$0xff]  ;;  %s190_s25 = scalar_lea.vmem [#allocation7], %s311_s5 }
  0x3c   : > { %s194_s6 = sld [smem:[#allocation3]]  ;;  %s231_s8 = sshll.u32 %s190_s25, 4  ;;  %s622_s8 = int_to_ptr.vmem [resolvable:$true] %s231_s8 }
  0x3d   : > { %s321_s10 = sshll.u32 %s531_s1, 8  ;;  %s218_s15 = scalar_lea.sflag [#allocation6], %s613_s4 }
  0x3e   : > { %s627_s14 = scalar_lea.hbm %s673_s3, %s321_s10  ;;  %s410_s2 = scalar_lea.vmem %s622_s8, 256 }
  0x3f   : > { %p411_p6 = scmp.ne.s32.totalorder %s622_s8, %s410_s2  ;;  %p680_p10 = scmp.ne.s32.totalorder %s677_s26, 0 }
  0x40   : > { %s481_s1 = smov [#allocation7]  }
  0x41   : > { %v197_v2 = vstv %s193_s9  ;;  %p412_p11 = pnand %p411_p6, %p680_p10  ;;  %s414_s21 = sshll.u32 %s481_s1, 4  ;;  %s415_s21 = int_to_ptr.vmem [resolvable:$false] %s414_s21 }
  0x42   : > { %v200_v3 = vstv %s194_s6  ;;  %v198_v4 = vmul.f32 %v197_v2, %v195_v0  ;;  %v199_v5 = vmul.f32 %v197_v2, %v196_v1  ;;  %s416_s22 = scalar_lea.vmem %s415_s21, 512  ;;  %p417_p8 = scmp.lt.s32.totalorder %s622_s8, %s415_s21 }
  0x43   : > { %p413_p12 = pneg %p412_p11  ;;  %p418_p9 = scmp.lt.s32.totalorder %s416_s22, %s410_s2 }
  0x44   : > { %v201_v6 = vadd.f32 %v200_v3, %v198_v4  ;;  %v202_v7 = vadd.f32 %v200_v3, %v199_v5 }
  0x45   : > { %p419_p13 = por %p418_p9, %p417_p8 }
  0x46   : > { %v313_v8 = vmul.f32 -1.442695, %v201_v6  ;;  %v314_v9 = vmul.f32 -1.442695, %v202_v7 }
  0x47   : > { %p420_p1 = pnand %p419_p13, %p413_p12 }
  0x48   : > { %372 = vpow2.f32 %v313_v8 }
  0x49   : > { %374 = vpow2.f32 %v314_v9 }
  0x52   : > { %v373_v10 = vpop.eup %372 }
  0x53   : > { %v375_v11 = vpop.eup %374  ;;  %v209_v12 = vadd.f32 1.0, %v373_v10 }
  0x54   : > { %v210_v13 = vadd.f32 1.0, %v375_v11 }
  0x55   : > { %376 = vrcp.f32 %v209_v12 }
  0x56   : > { %378 = vrcp.f32 %v210_v13 }
  0x5f   : > { %v377_v14 = vpop.eup %376 }
  0x60   : > { %v379_v15 = vpop.eup %378  ;;  %215 = vst [vmem:[%s190_s25] sm:$0xff] %v377_v14 }
  0x61   : > { %216 = vst [vmem:[%s190_s25 + $0x8] sm:$0xff] %v379_v15 }
  0x62   : > { %423 = shalt.err (!%p420_p1)
}
  0x63   : > { %s424_s24 = scalar_lea.hbm %s627_s14, 256  ;;  %s428_s30 = scalar_lea.hbm %s673_s3, 1024 }
  0x64   : > { %p425_p3 = scmp.ne.s32.totalorder %s627_s14, %s424_s24  ;;  %p429_p0 = scmp.lt.u32.totalorder %s627_s14, %s673_s3 }
  0x65   : > { %p430_p2 = scmp.lt.u32.totalorder %s428_s30, %s424_s24  ;;  %p432_p6 = scmp.lt.u32.totalorder %s424_s24, %s627_s14 }
  0x66   : > { %p426_p4 = pnand %p425_p3, %p680_p10 }
  0x67   : > { %p431_p7 = por %p430_p2, %p429_p0 }
  0x68   : > { %p427_p5 = pneg %p426_p4 }
  0x69   : > { %p433_p11 = por %p432_p6, %p431_p7 }
  0x6b   : > { %p434_p12 = pnand %p433_p11, %p427_p5 }
  0x6d   : > { %437 = shalt.err (!%p434_p12)
}
  0x6e   : > { %s482_s11 = smov 128   ;;  %s483_s9 = smov 8  }
  0x6f   : > { %324 = dma.vmem_to_hbm [thread:$0]  (%p680_p10), %s622_s8, 256, %s627_s14, %s218_s15, %s482_s11, %s482_s11, %s483_s9  }
  0x70 PF: > { %p335_p8 = scmp.ge.s32.totalorder %s476_s19, 2  ;;  %s246_s6 = sand.u32 1, %s464_s16  }
  0x71   : > { %p681_p9 = scmp.ne.s32.totalorder %s678_s27, 0  ;;  %s247_s25 = scalar_lea.sflag [#allocation6], %s246_s6 }
  0x73   : > { %p331_p13 = pnand %p335_p8, %p681_p9 }
  0x75   : > { %459 = dma.done.wait (!%p331_p13), %s247_s25, 256  }
  0x76   : > { %461 = vsyncadd (!%p331_p13), %s247_s25, 4294967040  ;;  %p18_p1 = scmp.ge.s32.totalorder %s535_s20, 6   ;;  %s682_s16 = smov %s468_s17 }
  0x77   : > { %s683_s17 = smov %s472_s18  ;;  %s684_s18 = smov %s547_s23 }
  0x78   : > { %s685_s19 = smov %s535_s20  ;;  %20 = sbr.rel (!%p18_p1) target bundleno = 8 (0x8), region = 77 }
  0x7f   :  { %252 = vsyncpa [#allocation5], 1 }
  0x80   :  { %254 = vsyncpa [#allocation5 + $0x1], 1 }
  0x81   :  { %255 = vsyncpa [#allocation6], 1 }
  0x82   :  { %257 = vsyncpa [#allocation6 + $0x1], 1 }

</bundles_post_ra>
